<compile_context>
chip_gen: v6e
topology: v6e:2x2x1
jax: 0.10.0
libtpu: 0.0.40
codegen_flags: <defaults>
</compile_context>

<pallas_src>
import functools

import numpy as np
import jax
import jax.numpy as jnp
from jax import lax
from jax.experimental import pallas as pl
from jax.experimental.pallas import tpu as pltpu


def _next_pow2(x):
    x = int(x)
    return 1 if x <= 1 else 1 << (x - 1).bit_length()


def _round_up(x, m):
    return ((int(x) + m - 1) // m) * m


def _vmem_capacity_bytes():
    try:
        return int(pltpu.get_tpu_info().vmem_capacity_bytes)
    except Exception:
        return 64 * 1024 * 1024   # conservative fallback: v7x per-TensorCore VMEM


def _auto_tile_t(n_pad, d_pad, num_triplets, vmem_cap):
    """Largest TILE_T (multiple of 128, <=2048) whose working set fits ~75% of VMEM."""
    budget = vmem_cap * 3 // 4
    resident = 2 * n_pad * d_pad * 4                 # emb.T block (2 pipeline buffers)
    per_col = 4 * (3 * n_pad + 4 * d_pad) + 64       # selectors + d_ap/d_an temps + indices per triplet
    avail = budget - resident
    if avail <= per_col * 128:
        cap_t = 128
    else:
        cap_t = min(2048, (avail // per_col) // 128 * 128)
    # Don't make tiles (much) bigger than the bucketed triplet count.
    want = _next_pow2(_round_up(num_triplets, 128))
    return int(max(128, min(cap_t, want)))


def _vmem_limit_bytes(n_pad, d_pad, tile_t, vmem_cap):
    work = (2 * n_pad * d_pad * 4        # resident emb.T (2 pipeline buffers)
            + 3 * n_pad * tile_t * 4     # +/-1 selector temporaries
            + 4 * d_pad * tile_t * 4     # d_ap, d_an and elementwise temps
            + 2 * 8 * tile_t * 4         # packed index blocks (2 buffers)
            + 2 * 8 * 128 * 4)           # partial-sum output blocks (2 buffers)
    return int(min(vmem_cap * 9 // 10, max(32 * 1024 * 1024, work + (8 << 20))))


def _triplet_tile_kernel(nt_ref, idx_ref, embt_ref, out_ref, *, margin, tile_t, n_pad):
    """One grid step: TILE_T triplets -> one partial loss sum (splat into an (8,128) block)."""
    t = pl.program_id(0)
    nt = nt_ref[0]                       # runtime number of real triplets (SMEM scalar)
    start = t * tile_t

    @pl.when(start >= nt)                # fully padded tile (shape bucketing): skip compute
    def _():
        out_ref[...] = jnp.zeros_like(out_ref)

    @pl.when(start < nt)
    def _():
        embt = embt_ref[...]                                   # (D_pad, N_pad) = emb.T
        a = idx_ref[0, 0:1, :]                                 # (1, TILE_T) anchor rows
        p = idx_ref[0, 1:2, :]                                 # positive rows
        ng = idx_ref[0, 2:3, :]                                # negative rows

        # +/-1 selection matrices built in-kernel (VPU); sublanes index rows of emb.
        row = lax.broadcasted_iota(jnp.int32, (n_pad, tile_t), 0)
        one_a = (row == a).astype(jnp.float32)                 # (N_pad, TILE_T)
        s_ap = one_a - (row == p).astype(jnp.float32)
        s_an = one_a - (row == ng).astype(jnp.float32)

        # Two MXU matmuls produce the gathered differences directly (exact +/-1 weights).
        d_ap = jnp.dot(embt, s_ap, preferred_element_type=jnp.float32)   # (D_pad, TILE_T): e_a - e_p
        d_an = jnp.dot(embt, s_an, preferred_element_type=jnp.float32)   # e_a - e_n

        # Fused reduction over the embedding dim: one cross-sublane reduce.
        diff = jnp.sum(d_ap * d_ap - d_an * d_an, axis=0, keepdims=True)  # (1, TILE_T)
        losses = jnp.maximum(diff + margin, 0.0)

        # Mask padded lanes (only the boundary tile has any), reduce to a per-tile
        # partial sum and splat it into the lane-dense (8, 128) output block.
        lane = lax.broadcasted_iota(jnp.int32, (1, tile_t), 1) + start
        losses = jnp.where(lane < nt, losses, 0.0)
        partial = jnp.sum(losses, axis=1, keepdims=True)        # (1, 1)
        out_ref[...] = jnp.broadcast_to(partial, (8, 128))


def _all_triplet_selector(target_np):
    """Vectorized AllTripletSelector (same triplets, same order as the original)."""
    labels = np.asarray(target_np)
    chunks = []
    for lbl in np.unique(labels):
        pos = np.flatnonzero(labels == lbl)
        if pos.size < 2:
            continue
        neg = np.flatnonzero(labels != lbl)
        if neg.size == 0:
            continue
        ai, pi = np.triu_indices(pos.size, k=1)      # == combinations(pos, 2)
        n_pairs, n_neg = ai.size, neg.size
        chunks.append(np.stack([np.repeat(pos[ai], n_neg),
                                np.repeat(pos[pi], n_neg),
                                np.tile(neg, n_pairs)], axis=1))
    if not chunks:
        return np.zeros((0, 3), dtype=np.int32)
    return np.concatenate(chunks, axis=0).astype(np.int32)


def online_triplet_loss(embeddings, target, margin=1.0, tile_t=None):
    """Forward pass of OnlineTripletLoss. Returns (mean_loss, num_triplets)."""
    embeddings = jnp.asarray(embeddings, jnp.float32)
    n, d = embeddings.shape

    # --- triplet selection (host-side glue, like self.triplet_selector) ---
    triplets = _all_triplet_selector(np.asarray(target))
    num_triplets = int(triplets.shape[0])
    if num_triplets == 0:
        # The original PyTorch would produce NaN (mean of empty tensor); guard here.
        return jnp.float32(0.0), 0

    # Layout-friendly padding: emb rows on lanes (128), embedding dim on sublanes (8).
    n_pad = _round_up(n, 128)
    d_pad = _round_up(d, 8)
    vmem_cap = _vmem_capacity_bytes()
    if tile_t is None:
        tile_t = _auto_tile_t(n_pad, d_pad, num_triplets, vmem_cap)
    else:
        tile_t = max(128, (int(tile_t) // 128) * 128)
    num_tiles = _next_pow2(pl.cdiv(num_triplets, tile_t))   # bucketed -> stable compiles
    t_pad = num_tiles * tile_t

    # Resident transposed embeddings (zero padding is exact for squared distances).
    embt_pad = jnp.pad(embeddings, ((0, n_pad - n), (0, d_pad - d))).T   # (D_pad, N_pad)

    # Pack anchor/positive/negative indices into one lane-dense input:
    # (num_tiles, 3, TILE_T); padded slots point at row 0 and are masked in-kernel.
    idx_host = np.zeros((3, t_pad), dtype=np.int32)
    idx_host[:, :num_triplets] = triplets.T
    idx_packed = jnp.asarray(np.ascontiguousarray(
        idx_host.reshape(3, num_tiles, tile_t).transpose(1, 0, 2)))
    nt_arr = jnp.asarray([num_triplets], jnp.int32)

    kernel = functools.partial(_triplet_tile_kernel, margin=float(margin),
                               tile_t=tile_t, n_pad=n_pad)

    grid_spec = pltpu.PrefetchScalarGridSpec(
        num_scalar_prefetch=1,                # nt_arr lands in SMEM
        grid=(num_tiles,),
        in_specs=[
            pl.BlockSpec((1, 3, tile_t), lambda t, nt: (t, 0, 0)),   # packed indices
            pl.BlockSpec((d_pad, n_pad), lambda t, nt: (0, 0)),      # emb.T (resident)
        ],
        out_specs=pl.BlockSpec((8, 128), lambda t, nt: (t, 0)),      # per-tile partial sums
    )

    per_tile = pl.pallas_call(
        kernel,
        out_shape=jax.ShapeDtypeStruct((num_tiles * 8, 128), jnp.float32),
        grid_spec=grid_spec,
        compiler_params=pltpu.CompilerParams(
            dimension_semantics=("parallel",),        # independent tiles -> both v7x TCs
            vmem_limit_bytes=_vmem_limit_bytes(n_pad, d_pad, tile_t, vmem_cap),
        ),
    )(nt_arr, idx_packed, embt_pad)

    partials = per_tile.reshape(num_tiles, 8, 128)[:, 0, 0]      # one scalar per tile
    loss = jnp.sum(partials) / jnp.float32(num_triplets)
    return loss, num_triplets


def _reference_loss(embeddings, target, margin):
    """Pure numpy reference reproducing the PyTorch forward exactly."""
    emb = np.asarray(embeddings, np.float32)
    trip = _all_triplet_selector(np.asarray(target))
    ap = np.sum((emb[trip[:, 0]] - emb[trip[:, 1]]) ** 2, axis=1)
    an = np.sum((emb[trip[:, 0]] - emb[trip[:, 2]]) ** 2, axis=1)
    losses = np.maximum(ap - an + margin, 0.0)
    return losses.mean(), len(trip)


if __name__ == "__main__":
    # Small deterministic example: 16 embeddings of dim 128, 4 classes -> 288 triplets.
    N, D = 16, 128
    MARGIN = 1.0

    key = jax.random.PRNGKey(0)
    embeddings = jax.random.normal(key, (N, D), dtype=jnp.float32)
    target = np.repeat(np.arange(4, dtype=np.int32), N // 4)  # labels 0..3

    ref_loss, ref_n = _reference_loss(np.asarray(embeddings), target, MARGIN)

    # (1) Explicit tile_t=128 -> exercises full, partially padded and fully
    #     padded (skipped) tiles on a multi-tile grid.
    loss, n_trip = online_triplet_loss(embeddings, target, margin=MARGIN, tile_t=128)
    loss = jax.block_until_ready(loss)
    assert n_trip == ref_n, (n_trip, ref_n)
    assert np.allclose(np.asarray(loss), ref_loss, rtol=1e-4, atol=1e-4), (
        float(loss), float(ref_loss))

    # (2) Auto (VMEM-budgeted) tile size.
    loss2, n_trip2 = online_triplet_loss(embeddings, target, margin=MARGIN)
    loss2 = jax.block_until_ready(loss2)
    assert n_trip2 == ref_n, (n_trip2, ref_n)
    assert np.allclose(np.asarray(loss2), ref_loss, rtol=1e-4, atol=1e-4), (
        float(loss2), float(ref_loss))

    print("KERNEL_OK")
</pallas_src>

<mosaic_0001>
module attributes {stable_mosaic.version = 11 : i64} {
  func.func @_triplet_tile_kernel(%arg0: i32, %arg1: memref<1xi32, #tpu.memory_space<smem>>, %arg2: memref<1x3x128xi32, #tpu.memory_space<vmem>>, %arg3: memref<128x128xf32, #tpu.memory_space<vmem>>, %arg4: memref<8x128xf32, #tpu.memory_space<vmem>>) attributes {dimension_semantics = [#tpu.dimension_semantics<parallel>], iteration_bounds = array<i64: 4>, scalar_prefetch = 1 : i64, scratch_operands = 0 : i64, tpu.core_type = #tpu.core_type<tc>, window_params = [{transform_indices = @transform_0, window_bounds = array<i64: 1, 3, 128>}, {pipeline_mode = #tpu.pipeline_mode<synchronous>, transform_indices = @transform_1, window_bounds = array<i64: 128, 128>}, {transform_indices = @transform_2, window_bounds = array<i64: 8, 128>}]} {
    %c0 = arith.constant 0 : index
    %0 = memref.load %arg1[%c0] : memref<1xi32, #tpu.memory_space<smem>>
    %c128_i32 = arith.constant 128 : i32
    %1 = arith.muli %arg0, %c128_i32 : i32
    %2 = arith.cmpi sge, %1, %0 : i32
    %3 = arith.extui %2 : i1 to i32
    %c0_i32 = arith.constant 0 : i32
    %4 = arith.cmpi ne, %3, %c0_i32 : i32
    scf.if %4 {
      %cst = arith.constant 0.000000e+00 : f32
      %8 = vector.broadcast %cst : f32 to vector<8x128xf32>
      %c0_1 = arith.constant 0 : index
      %c0_2 = arith.constant 0 : index
      %9 = vector.load %arg4[%c0_1, %c0_2] : memref<8x128xf32, #tpu.memory_space<vmem>>, vector<8x128xf32>
      tpu.vector_store %arg4[%c0_1, %c0_2], %8 {strides = array<i32>} : memref<8x128xf32, #tpu.memory_space<vmem>>, vector<8x128xf32>,
    } else {
    }
    %5 = arith.cmpi slt, %1, %0 : i32
    %6 = arith.extui %5 : i1 to i32
    %c0_i32_0 = arith.constant 0 : i32
    %7 = arith.cmpi ne, %6, %c0_i32_0 : i32
    scf.if %7 {
      %c0_1 = arith.constant 0 : index
      %c0_2 = arith.constant 0 : index
      %8 = vector.load %arg3[%c0_1, %c0_2] : memref<128x128xf32, #tpu.memory_space<vmem>>, vector<128x128xf32>
      %c0_3 = arith.constant 0 : index
      %c0_4 = arith.constant 0 : index
      %c0_5 = arith.constant 0 : index
      %9 = vector.load %arg2[%c0_3, %c0_4, %c0_5] : memref<1x3x128xi32, #tpu.memory_space<vmem>>, vector<1x1x128xi32>
      %10 = vector.shape_cast %9 : vector<1x1x128xi32> to vector<1x128xi32>
      %c0_6 = arith.constant 0 : index
      %c1 = arith.constant 1 : index
      %c0_7 = arith.constant 0 : index
      %11 = vector.load %arg2[%c0_6, %c1, %c0_7] : memref<1x3x128xi32, #tpu.memory_space<vmem>>, vector<1x1x128xi32>
      %12 = vector.shape_cast %11 : vector<1x1x128xi32> to vector<1x128xi32>
      %c0_8 = arith.constant 0 : index
      %c2 = arith.constant 2 : index
      %c0_9 = arith.constant 0 : index
      %13 = vector.load %arg2[%c0_8, %c2, %c0_9] : memref<1x3x128xi32, #tpu.memory_space<vmem>>, vector<1x1x128xi32>
      %14 = vector.shape_cast %13 : vector<1x1x128xi32> to vector<1x128xi32>
      %15 = tpu.iota {dimensions = array<i32: 0>} : vector<128x128xi32>
      %16 = vector.broadcast %10 : vector<1x128xi32> to vector<128x128xi32>
      %17 = arith.cmpi eq, %15, %16 : vector<128x128xi32>
      %18 = arith.extui %17 : vector<128x128xi1> to vector<128x128xi32>
      %19 = arith.sitofp %18 : vector<128x128xi32> to vector<128x128xf32>
      %20 = vector.broadcast %12 : vector<1x128xi32> to vector<128x128xi32>
      %21 = arith.cmpi eq, %15, %20 : vector<128x128xi32>
      %22 = arith.extui %21 : vector<128x128xi1> to vector<128x128xi32>
      %23 = arith.sitofp %22 : vector<128x128xi32> to vector<128x128xf32>
      %24 = arith.subf %19, %23 : vector<128x128xf32>
      %25 = vector.broadcast %14 : vector<1x128xi32> to vector<128x128xi32>
      %26 = arith.cmpi eq, %15, %25 : vector<128x128xi32>
      %27 = arith.extui %26 : vector<128x128xi1> to vector<128x128xi32>
      %28 = arith.sitofp %27 : vector<128x128xi32> to vector<128x128xf32>
      %29 = arith.subf %19, %28 : vector<128x128xf32>
      %cst = arith.constant dense<0.000000e+00> : vector<128x128xf32>
      %30 = tpu.matmul %8, %24, %cst {dimension_numbers = #tpu.dot_dimension_numbers<[1], [0], [0], [1], [0, 0, 1, 1], [], []>} : vector<128x128xf32>, vector<128x128xf32>, vector<128x128xf32> -> vector<128x128xf32>
      %cst_10 = arith.constant dense<0.000000e+00> : vector<128x128xf32>
      %31 = tpu.matmul %8, %29, %cst_10 {dimension_numbers = #tpu.dot_dimension_numbers<[1], [0], [0], [1], [0, 0, 1, 1], [], []>} : vector<128x128xf32>, vector<128x128xf32>, vector<128x128xf32> -> vector<128x128xf32>
      %32 = arith.mulf %30, %30 : vector<128x128xf32>
      %33 = arith.mulf %31, %31 : vector<128x128xf32>
      %34 = arith.subf %32, %33 : vector<128x128xf32>
      %cst_11 = arith.constant dense<0.000000e+00> : vector<128xf32>
      %35 = vector.multi_reduction <add>, %34, %cst_11 [0] : vector<128x128xf32> to vector<128xf32>
      %36 = vector.shape_cast %35 : vector<128xf32> to vector<1x128xf32>
      %cst_12 = arith.constant 1.000000e+00 : f32
      %37 = vector.broadcast %cst_12 : f32 to vector<1x128xf32>
      %38 = arith.addf %36, %37 : vector<1x128xf32>
      %cst_13 = arith.constant 0.000000e+00 : f32
      %39 = vector.broadcast %cst_13 : f32 to vector<1x128xf32>
      %40 = arith.maximumf %38, %39 : vector<1x128xf32>
      %41 = tpu.iota {dimensions = array<i32: 1>} : vector<1x128xi32>
      %42 = vector.broadcast %1 : i32 to vector<1x128xi32>
      %43 = arith.addi %41, %42 : vector<1x128xi32>
      %44 = vector.broadcast %0 : i32 to vector<1x128xi32>
      %45 = arith.cmpi slt, %43, %44 : vector<1x128xi32>
      %cst_14 = arith.constant 0.000000e+00 : f32
      %46 = vector.broadcast %cst_14 : f32 to vector<1x128xf32>
      %47 = arith.select %45, %40, %46 : vector<1x128xi1>, vector<1x128xf32>
      %cst_15 = arith.constant dense<0.000000e+00> : vector<1xf32>
      %48 = vector.multi_reduction <add>, %47, %cst_15 [1] : vector<1x128xf32> to vector<1xf32>
      %49 = vector.shape_cast %48 : vector<1xf32> to vector<1x1xf32>
      %50 = vector.shape_cast %49 : vector<1x1xf32> to vector<1x1xf32>
      %51 = vector.broadcast %50 : vector<1x1xf32> to vector<8x128xf32>
      %c0_16 = arith.constant 0 : index
      %c0_17 = arith.constant 0 : index
      %52 = vector.load %arg4[%c0_16, %c0_17] : memref<8x128xf32, #tpu.memory_space<vmem>>, vector<8x128xf32>
      tpu.vector_store %arg4[%c0_16, %c0_17], %51 {strides = array<i32>} : memref<8x128xf32, #tpu.memory_space<vmem>>, vector<8x128xf32>,
    } else {
    }
    return
  }
  func.func @transform_0(%arg0: i32, %arg1: memref<1xi32, #tpu.memory_space<smem>>) -> (i32, i32, i32) {
    %c0_i32 = arith.constant 0 : i32
    %c0_i32_0 = arith.constant 0 : i32
    %c0_i32_1 = arith.constant 0 : i32
    return %arg0, %c0_i32, %c0_i32_0 : i32, i32, i32
  }
  func.func @transform_1(%arg0: i32, %arg1: memref<1xi32, #tpu.memory_space<smem>>) -> (i32, i32) {
    %c0_i32 = arith.constant 0 : i32
    %c0_i32_0 = arith.constant 0 : i32
    %c0_i32_1 = arith.constant 0 : i32
    return %c0_i32, %c0_i32_0 : i32, i32
  }
  func.func @transform_2(%arg0: i32, %arg1: memref<1xi32, #tpu.memory_space<smem>>) -> (i32, i32) {
    %c0_i32 = arith.constant 0 : i32
    %c0_i32_0 = arith.constant 0 : i32
    return %arg0, %c0_i32 : i32, i32
  }
}

</mosaic_0001>

<bundles_post_ra>
// kernel: tpu_custom_call.1
= control target key start
LH: loop header
LB: loop body
LE: loop exit
PB: predicated region body
PF: predicated region fallthrough
CT: control target
= control target key end

     0   :  { %s1536_s0 = inlined_call_operand.<no memory space> [shape: s32[1], index: 0, kind: input, shape index: {}]   ;;  %s1537_s1 = inlined_call_operand.vmem [shape: s32[4,3,128], index: 1, kind: input, shape index: {}]   ;;  %s1538_s2 = inlined_call_operand.hbm [shape: f32[128,128], index: 2, kind: input, shape index: {}]   ;;  %s1539_s3 = inlined_call_operand.hbm [shape: f32[32,128], index: 3, kind: output, shape index: {}]  }
   0x1   :  { %8 = sst [smem:[#allocation3]] %s1536_s0 }
   0x2   :  { %9 = vsyncpa [#allocation5], 0 }
   0x3   :  { %10 = vsyncpa [#allocation6], 0 }
   0x4   :  { %12 = vsyncpa [#allocation6 + $0x1], 0  ;;  %s1264_s14 = smov 0   ;;  %s1266_s15 = smov 0  }
   0x5   :  { %s1268_s16 = smov 0   ;;  %s1270_s17 = smov 0  }
   0x6 LB: > { %s1285_s0 = sadd.s32 4294967295, %s1233_s17   ;;  %s847_s18 = sadd.s32 4294967294, %s1233_s17   ;;  %s1233_s17 = sphi %s1270_s17, %s1547_s17   ;;  %s1229_s16 = sphi %s1268_s16, %s1546_s16   ;;  %s1225_s15 = sphi %s1266_s15, %s1545_s15   ;;  %s1221_s14 = sphi %s1264_s14, %s1544_s14  }
   0x7   : > { %s1289_s19 = sadd.s32 1, %s1233_s17   ;;  %s72_s20 = sadd.s32 1, %s1229_s16 }
   0x8   : > { %s69_s21 = ssub.s32 %s1233_s17, %s1289_s19  ;;  %p82_p0 = scmp.ne.s32.totalorder %s1229_s16, %s1225_s15 }
   0x9   : > { %p70_p1 = scmp.eq.s32.totalorder %s69_s21, 0  ;;  %p83_p2 = scmp.eq.s32.totalorder %s1285_s0, 3 }
   0xa   : > { %p88_p3 = scmp.ne.s32.totalorder %s1225_s15, %s1221_s14  ;;  %p89_p4 = scmp.eq.s32.totalorder %s847_s18, 3 }
   0xb   : > { %s1300_s22 = scalar_select %p70_p1, %s1229_s16, %s72_s20  }
   0xc   : > { %p1302_p5 = por %p83_p2, %p82_p0  ;;  %p1306_p6 = por %p89_p4, %p88_p3 }
   0xd   : > { %p848_p7 = scmp.ge.s32.totalorder %s1233_s17, 1  ;;  %p96_p8 = scmp.lt.s32.totalorder %s1233_s17, 5 }
   0xe   : > { %s1541_s24 = scalar_select %p1306_p6, 1, 0 }
   0xf   : > { %p1103_p9 = scmp.eq.s32.totalorder %s1285_s0, 0  ;;  %p1313_p10 = pnand %p848_p7, %p96_p8 }
  0x10   : > { %s1235_s26 = smov [#allocation4]  }
  0x11   : > { %s108_s27 = sshll.u32 %s1235_s26, 4  ;;  %p1095_p11 = pneg %p1313_p10  ;;  %s109_s27 = int_to_ptr.vmem [resolvable:$true] %s108_s27 }
  0x12   : > { %s1154_s28 = scalar_lea.vmem %s109_s27, 2048  ;;  %p1162_p3 = scmp.lt.s32.totalorder %s109_s27, %s109_s27 }
  0x13   : > { %p1096_p12 = pnand %p1103_p9, %p1095_p11  ;;  %p1155_p0 = scmp.ne.s32.totalorder %s109_s27, %s1154_s28 }
  0x14   : > { %p1163_p4 = scmp.lt.s32.totalorder %s1154_s28, %s1154_s28 }
  0x15   : > { %p1145_p13 = pneg %p1096_p12 }
  0x16   : > { %p1164_p6 = por %p1163_p4, %p1162_p3 }
  0x17   : > { %p1157_p1 = pnand %p1155_p0, %p1145_p13 }
  0x19   : > { %p1158_p2 = pneg %p1157_p1 }
  0x1b   : > { %p1165_p7 = pnand %p1164_p6, %p1158_p2 }
  0x1d   : > { %1168 = shalt.err (!%p1165_p7)
}
  0x1e   : > { %s1236_s29 = smov 128   ;;  %s1237_s30 = smov 8  }
  0x1f   : > { %1098 = dma.hbm_to_vmem [thread:$0]  (!%p1096_p12), %s1538_s2, 2048, %s109_s27, [#allocation5], %s1236_s29, %s1236_s29, %s1237_s30  }
  0x20   : > { %131 = sbr.rel (%p1313_p10) target bundleno = 516 (0x204), region = 28 }
  0x25   : > { %1212 = dma.done.wait (%p1103_p9), [#allocation5], 2048  }
  0x26   : > { %1214 = vsyncadd (%p1103_p9), [#allocation5], 4294965248  ;;  %s149_s6 = sand.u32 1, %s1225_s15   ;;  %p152_p6 = scmp.lt.s32.totalorder %s1285_s0, 3 }
  0x27   : > { %s1332_s7 = sld [smem:[#allocation3]]  ;;  %s853_s8 = sshll.u32 %s149_s6, 3 }
  0x28   : > { %s1337_s9 = sshll.u32 %s1285_s0, 7  ;;  %s1549_s0 = smov (!%p152_p6, %s1285_s0), 3 }
  0x29   : > { %s854_s10 = sshll.u32 %s1549_s0, 2  ;;  %s1343_s18 = scalar_lea.vmem [#allocation7], %s853_s8 }
  0x2a   : > { %s155_s13 = scalar_lea.vmem %s1537_s1, %s854_s10 }
  0x2d   : > { %p856_p8 = scmp.lt.s32.totalorder %s1337_s9, %s1332_s7 }
  0x2f   : > { %161 = sbr.rel (%p856_p8) target bundleno = 54 (0x36), region = 36 }
  0x34   : > { %v1238_v0 = vmov 0.0  }
  0x35   : > { %162 = vst [vmem:[%s1343_s18] sm:$0xff] %v1238_v0 }
  0x36 PF: > { %p857_p9 = scmp.ge.s32.totalorder %s1337_s9, %s1332_s7 }
  0x38   : > { %166 = sbr.rel (%p857_p9) target bundleno = 493 (0x1ed), region = 40 }
  0x3d   : > { %v186_v1 = vlaneseq  ;;  %v167_v2 = vld [vmem:[#allocation4] sm:$0xff]  ;;  %v1239_v15 = vmov 0.0  }
  0x3e   : > { %1009 = vmatprep.mubr.f32.mxu0 %v167_v2  ;;  %1065 = vmatprep.mubr.f32.mxu1 %v167_v2  ;;  %v1350_v3 = vld [vmem:[%s155_s13] ss:$0 sm:$0xff]  ;;  %v1355_v5 = vld [vmem:[%s155_s13 + $0x1] ss:$0 sm:$0xff]  ;;  %v1357_v6 = vld [vmem:[%s155_s13 + $0x2] ss:$0 sm:$0xff] }
  0x3f   : > { %v1353_v4 = vshrl.u32 %v186_v1, 7 }
  0x41   : > { %v202_v7 = vadd.s32 120, %v1353_v4  ;;  %v201_v8 = vadd.s32 112, %v1353_v4  ;;  %v200_v9 = vadd.s32 104, %v1353_v4  ;;  %v199_v10 = vadd.s32 96, %v1353_v4 }
  0x42   : > { %v198_v11 = vadd.s32 88, %v1353_v4  ;;  %v1365_v12 = vadd.s32 80, %v1353_v4  ;;  %v1368_v13 = vadd.s32 72, %v1353_v4  ;;  %v1371_v14 = vadd.s32 64, %v1353_v4 }
  0x43   : > { %vm222_vm0 = vcmp.eq.s32.totalorder %v202_v7, %v1350_v3  ;;  %vm274_vm1 = vcmp.eq.s32.totalorder %v202_v7, %v1355_v5  ;;  %vm342_vm2 = vcmp.eq.s32.totalorder %v202_v7, %v1357_v6  ;;  %vm221_vm3 = vcmp.eq.s32.totalorder %v201_v8, %v1350_v3 }
  0x44   : > { %v874_v16 = vsel %vm222_vm0, 1.0, %v1239_v15  ;;  %v891_v17 = vsel %vm274_vm1, 1.0, %v1239_v15  ;;  %v908_v18 = vsel %vm342_vm2, 1.0, %v1239_v15  ;;  %v873_v19 = vsel %vm221_vm3, 1.0, %v1239_v15 }
  0x45   : > { %v322_v20 = vsub.f32 %v874_v16, %v891_v17  ;;  %v390_v21 = vsub.f32 %v874_v16, %v908_v18  ;;  %vm273_vm4 = vcmp.eq.s32.totalorder %v201_v8, %v1355_v5  ;;  %vm341_vm5 = vcmp.eq.s32.totalorder %v201_v8, %v1357_v6 }
  0x46   : > { %v890_v22 = vsel %vm273_vm4, 1.0, %v1239_v15  ;;  %v907_v23 = vsel %vm341_vm5, 1.0, %v1239_v15  ;;  %vm220_vm6 = vcmp.eq.s32.totalorder %v200_v9, %v1350_v3  ;;  %vm272_vm7 = vcmp.eq.s32.totalorder %v200_v9, %v1355_v5 }
  0x47   : > { %977 = vmatprep.subr.mxu0 %v322_v20  ;;  %1033 = vmatprep.subr.mxu1 %v390_v21  ;;  %v321_v24 = vsub.f32 %v873_v19, %v890_v22  ;;  %v389_v25 = vsub.f32 %v873_v19, %v907_v23  ;;  %v872_v26 = vsel %vm220_vm6, 1.0, %v1239_v15  ;;  %v889_v27 = vsel %vm272_vm7, 1.0, %v1239_v15 }
  0x48   : > { %978 = vmatpush3.msra.mxu0 %v322_v20  ;;  %1034 = vmatpush3.msra.mxu1 %v390_v21  ;;  %v320_v28 = vsub.f32 %v872_v26, %v889_v27  ;;  %vm340_vm8 = vcmp.eq.s32.totalorder %v200_v9, %v1357_v6  ;;  %vm219_vm9 = vcmp.eq.s32.totalorder %v199_v10, %v1350_v3  ;;  %v1392_v29 = vadd.s32 56, %v1353_v4 }
  0x49   : > { %979 = vmatprep.subr.mxu0 %v321_v24  ;;  %1035 = vmatprep.subr.mxu1 %v389_v25  ;;  %v906_v30 = vsel %vm340_vm8, 1.0, %v1239_v15  ;;  %v871_v31 = vsel %vm219_vm9, 1.0, %v1239_v15  ;;  %vm271_vm10 = vcmp.eq.s32.totalorder %v199_v10, %v1355_v5  ;;  %vm339_vm11 = vcmp.eq.s32.totalorder %v199_v10, %v1357_v6 }
  0x4a   : > { %980 = vmatpush3.msra.mxu0 %v321_v24  ;;  %1036 = vmatpush3.msra.mxu1 %v389_v25  ;;  %v388_v32 = vsub.f32 %v872_v26, %v906_v30  ;;  %v888_v33 = vsel %vm271_vm10, 1.0, %v1239_v15  ;;  %v905_v34 = vsel %vm339_vm11, 1.0, %v1239_v15  ;;  %vm218_vm12 = vcmp.eq.s32.totalorder %v198_v11, %v1350_v3 }
  0x4b   : > { %981 = vmatprep.subr.mxu0 %v320_v28  ;;  %v319_v35 = vsub.f32 %v871_v31, %v888_v33  ;;  %v387_v36 = vsub.f32 %v871_v31, %v905_v34  ;;  %v870_v37 = vsel %vm218_vm12, 1.0, %v1239_v15  ;;  %vm270_vm13 = vcmp.eq.s32.totalorder %v198_v11, %v1355_v5 }
  0x4c   : > { %1037 = vmatprep.subr.mxu1 %v388_v32  ;;  %982 = vmatpush3.msra.mxu0 %v320_v28  ;;  %v887_v38 = vsel %vm270_vm13, 1.0, %v1239_v15  ;;  %vm338_vm14 = vcmp.eq.s32.totalorder %v198_v11, %v1357_v6  ;;  %vm217_vm15 = vcmp.eq.s32.totalorder %v1365_v12, %v1350_v3  ;;  %vm269_vm0 = vcmp.eq.s32.totalorder %v1365_v12, %v1355_v5 }
  0x4d   : > { %1038 = vmatpush3.msra.mxu1 %v388_v32  ;;  %983 = vmatprep.subr.mxu0 %v319_v35  ;;  %v318_v39 = vsub.f32 %v870_v37, %v887_v38  ;;  %v904_v40 = vsel %vm338_vm14, 1.0, %v1239_v15  ;;  %v869_v41 = vsel %vm217_vm15, 1.0, %v1239_v15  ;;  %v886_v42 = vsel %vm269_vm0, 1.0, %v1239_v15 }
  0x4e   : > { %1039 = vmatprep.subr.mxu1 %v387_v36  ;;  %984 = vmatpush3.msra.mxu0 %v319_v35  ;;  %v386_v43 = vsub.f32 %v870_v37, %v904_v40  ;;  %v317_v44 = vsub.f32 %v869_v41, %v886_v42  ;;  %vm337_vm1 = vcmp.eq.s32.totalorder %v1365_v12, %v1357_v6  ;;  %v193_v45 = vadd.s32 48, %v1353_v4 }
  0x4f   : > { %1040 = vmatpush3.msra.mxu1 %v387_v36  ;;  %985 = vmatprep.subr.mxu0 %v318_v39  ;;  %v903_v46 = vsel %vm337_vm1, 1.0, %v1239_v15  ;;  %vm216_vm2 = vcmp.eq.s32.totalorder %v1368_v13, %v1350_v3  ;;  %vm268_vm3 = vcmp.eq.s32.totalorder %v1368_v13, %v1355_v5  ;;  %vm336_vm4 = vcmp.eq.s32.totalorder %v1368_v13, %v1357_v6 }
  0x50   : > { %1041 = vmatprep.subr.mxu1 %v386_v43  ;;  %986 = vmatpush3.msra.mxu0 %v318_v39  ;;  %v385_v47 = vsub.f32 %v869_v41, %v903_v46  ;;  %v868_v48 = vsel %vm216_vm2, 1.0, %v1239_v15  ;;  %v885_v49 = vsel %vm268_vm3, 1.0, %v1239_v15  ;;  %v902_v50 = vsel %vm336_vm4, 1.0, %v1239_v15  ;;  %v174_v46 = vld [vmem:[#allocation4 + $0x38] sm:$0xff] }
  0x51   : > { %1042 = vmatpush3.msra.mxu1 %v386_v43  ;;  %987 = vmatprep.subr.mxu0 %v317_v44  ;;  %v316_v51 = vsub.f32 %v868_v48, %v885_v49  ;;  %v384_v52 = vsub.f32 %v868_v48, %v902_v50  ;;  %vm215_vm5 = vcmp.eq.s32.totalorder %v1371_v14, %v1350_v3  ;;  %v192_v53 = vadd.s32 40, %v1353_v4  ;;  %v176_v48 = vld [vmem:[#allocation4 + $0x48] sm:$0xff]  ;;  %v177_v49 = vld [vmem:[#allocation4 + $0x50] sm:$0xff]  ;;  %v178_v50 = vld [vmem:[#allocation4 + $0x58] sm:$0xff] }
  0x52   : > { %1043 = vmatprep.subr.mxu1 %v385_v47  ;;  %988 = vmatpush3.msra.mxu0 %v317_v44  ;;  %v867_v54 = vsel %vm215_vm5, 1.0, %v1239_v15  ;;  %vm267_vm6 = vcmp.eq.s32.totalorder %v1371_v14, %v1355_v5  ;;  %vm335_vm7 = vcmp.eq.s32.totalorder %v1371_v14, %v1357_v6  ;;  %vm214_vm8 = vcmp.eq.s32.totalorder %v1392_v29, %v1350_v3  ;;  %v168_v44 = vld [vmem:[#allocation4 + $0x8] sm:$0xff] }
  0x53   : > { %1044 = vmatpush3.msra.mxu1 %v385_v47  ;;  %989 = vmatprep.subr.mxu0 %v316_v51  ;;  %v884_v55 = vsel %vm267_vm6, 1.0, %v1239_v15  ;;  %v901_v56 = vsel %vm335_vm7, 1.0, %v1239_v15  ;;  %v866_v57 = vsel %vm214_vm8, 1.0, %v1239_v15  ;;  %vm266_vm9 = vcmp.eq.s32.totalorder %v1392_v29, %v1355_v5  ;;  %v175_v47 = vld [vmem:[#allocation4 + $0x40] sm:$0xff] }
  0x54   : > { %1045 = vmatprep.subr.mxu1 %v384_v52  ;;  %990 = vmatpush3.msra.mxu0 %v316_v51  ;;  %v315_v58 = vsub.f32 %v867_v54, %v884_v55  ;;  %v383_v59 = vsub.f32 %v867_v54, %v901_v56  ;;  %v883_v60 = vsel %vm266_vm9, 1.0, %v1239_v15  ;;  %vm334_vm10 = vcmp.eq.s32.totalorder %v1392_v29, %v1357_v6  ;;  %v179_v51 = vld [vmem:[#allocation4 + $0x60] sm:$0xff]  ;;  %v182_v54 = vld [vmem:[#allocation4 + $0x78] sm:$0xff] }
  0x55   : > { %1046 = vmatpush3.msra.mxu1 %v384_v52  ;;  %v314_v61 = vsub.f32 %v866_v57, %v883_v60  ;;  %v900_v62 = vsel %vm334_vm10, 1.0, %v1239_v15  ;;  %vm213_vm11 = vcmp.eq.s32.totalorder %v193_v45, %v1350_v3  ;;  %vm265_vm12 = vcmp.eq.s32.totalorder %v193_v45, %v1355_v5  ;;  %v180_v52 = vld [vmem:[#allocation4 + $0x68] sm:$0xff] }
  0x56   : > { %991 = vmatprep.subr.mxu0 %v315_v58  ;;  %1047 = vmatprep.subr.mxu1 %v383_v59  ;;  %v382_v63 = vsub.f32 %v866_v57, %v900_v62  ;;  %v865_v0 = vsel %vm213_vm11, 1.0, %v1239_v15  ;;  %v882_v2 = vsel %vm265_vm12, 1.0, %v1239_v15  ;;  %vm333_vm13 = vcmp.eq.s32.totalorder %v193_v45, %v1357_v6  ;;  %v169_v45 = vld [vmem:[#allocation4 + $0x10] sm:$0xff] }
  0x57   : > { %992 = vmatpush3.msra.mxu0 %v315_v58  ;;  %1048 = vmatpush3.msra.mxu1 %v383_v59  ;;  %v313_v7 = vsub.f32 %v865_v0, %v882_v2  ;;  %v899_v8 = vsel %vm333_vm13, 1.0, %v1239_v15  ;;  %vm212_vm14 = vcmp.eq.s32.totalorder %v192_v53, %v1350_v3  ;;  %vm264_vm15 = vcmp.eq.s32.totalorder %v192_v53, %v1355_v5 }
  0x58   : > { %993 = vmatprep.subr.mxu0 %v314_v61  ;;  %1049 = vmatprep.subr.mxu1 %v382_v63  ;;  %v381_v9 = vsub.f32 %v865_v0, %v899_v8  ;;  %v864_v10 = vsel %vm212_vm14, 1.0, %v1239_v15  ;;  %v881_v11 = vsel %vm264_vm15, 1.0, %v1239_v15  ;;  %vm332_vm0 = vcmp.eq.s32.totalorder %v192_v53, %v1357_v6  ;;  %v181_v53 = vld [vmem:[#allocation4 + $0x70] sm:$0xff] }
  0x59   : > { %994 = vmatpush3.msra.mxu0 %v314_v61  ;;  %1050 = vmatpush3.msra.mxu1 %v382_v63  ;;  %v312_v12 = vsub.f32 %v864_v10, %v881_v11  ;;  %v898_v13 = vsel %vm332_vm0, 1.0, %v1239_v15  ;;  %v191_v14 = vadd.s32 32, %v1353_v4  ;;  %v190_v16 = vadd.s32 24, %v1353_v4 }
  0x5a   : > { %995 = vmatprep.subr.mxu0 %v313_v7  ;;  %1051 = vmatprep.subr.mxu1 %v381_v9  ;;  %v380_v17 = vsub.f32 %v864_v10, %v898_v13  ;;  %v189_v18 = vadd.s32 16, %v1353_v4  ;;  %vm207_vm1 = vcmp.eq.s32.totalorder %v1353_v4, %v1350_v3  ;;  %v188_v19 = vadd.s32 8, %v1353_v4 }
  0x5b   : > { %996 = vmatpush3.msra.mxu0 %v313_v7  ;;  %1052 = vmatpush3.msra.mxu1 %v381_v9  ;;  %vm211_vm2 = vcmp.eq.s32.totalorder %v191_v14, %v1350_v3  ;;  %vm263_vm3 = vcmp.eq.s32.totalorder %v191_v14, %v1355_v5  ;;  %vm331_vm4 = vcmp.eq.s32.totalorder %v191_v14, %v1357_v6  ;;  %v859_v33 = vsel %vm207_vm1, 1.0, %v1239_v15 }
  0x5c   : > { %997 = vmatprep.subr.mxu0 %v312_v12  ;;  %1053 = vmatprep.subr.mxu1 %v380_v17  ;;  %v863_v20 = vsel %vm211_vm2, 1.0, %v1239_v15  ;;  %v880_v21 = vsel %vm263_vm3, 1.0, %v1239_v15  ;;  %v897_v22 = vsel %vm331_vm4, 1.0, %v1239_v15  ;;  %vm210_vm5 = vcmp.eq.s32.totalorder %v190_v16, %v1350_v3 }
  0x5d   : > { %998 = vmatpush3.msra.mxu0 %v312_v12  ;;  %1054 = vmatpush3.msra.mxu1 %v380_v17  ;;  %v311_v23 = vsub.f32 %v863_v20, %v880_v21  ;;  %v379_v24 = vsub.f32 %v863_v20, %v897_v22  ;;  %v862_v25 = vsel %vm210_vm5, 1.0, %v1239_v15  ;;  %vm262_vm6 = vcmp.eq.s32.totalorder %v190_v16, %v1355_v5 }
  0x5e   : > { %v879_v26 = vsel %vm262_vm6, 1.0, %v1239_v15  ;;  %vm330_vm7 = vcmp.eq.s32.totalorder %v190_v16, %v1357_v6  ;;  %vm209_vm8 = vcmp.eq.s32.totalorder %v189_v18, %v1350_v3  ;;  %vm261_vm9 = vcmp.eq.s32.totalorder %v189_v18, %v1355_v5 }
  0x5f   : > { %999 = vmatprep.subr.mxu0 %v311_v23  ;;  %1055 = vmatprep.subr.mxu1 %v379_v24  ;;  %v310_v27 = vsub.f32 %v862_v25, %v879_v26  ;;  %v896_v28 = vsel %vm330_vm7, 1.0, %v1239_v15  ;;  %v861_v29 = vsel %vm209_vm8, 1.0, %v1239_v15  ;;  %v878_v30 = vsel %vm261_vm9, 1.0, %v1239_v15 }
  0x60   : > { %1000 = vmatpush3.msra.mxu0 %v311_v23  ;;  %1056 = vmatpush3.msra.mxu1 %v379_v24  ;;  %v378_v31 = vsub.f32 %v862_v25, %v896_v28  ;;  %v309_v32 = vsub.f32 %v861_v29, %v878_v30  ;;  %vm329_vm10 = vcmp.eq.s32.totalorder %v189_v18, %v1357_v6 }
  0x61   : > { %1001 = vmatprep.subr.mxu0 %v310_v27  ;;  %v895_v34 = vsel %vm329_vm10, 1.0, %v1239_v15  ;;  %vm208_vm11 = vcmp.eq.s32.totalorder %v188_v19, %v1350_v3  ;;  %vm260_vm12 = vcmp.eq.s32.totalorder %v188_v19, %v1355_v5  ;;  %vm328_vm13 = vcmp.eq.s32.totalorder %v188_v19, %v1357_v6 }
  0x62   : > { %1057 = vmatprep.subr.mxu1 %v378_v31  ;;  %1002 = vmatpush3.msra.mxu0 %v310_v27  ;;  %v377_v35 = vsub.f32 %v861_v29, %v895_v34  ;;  %v860_v36 = vsel %vm208_vm11, 1.0, %v1239_v15  ;;  %v877_v37 = vsel %vm260_vm12, 1.0, %v1239_v15  ;;  %v894_v38 = vsel %vm328_vm13, 1.0, %v1239_v15 }
  0x63   : > { %1058 = vmatpush3.msra.mxu1 %v378_v31  ;;  %1003 = vmatprep.subr.mxu0 %v309_v32  ;;  %v308_v39 = vsub.f32 %v860_v36, %v877_v37  ;;  %v376_v40 = vsub.f32 %v860_v36, %v894_v38  ;;  %vm259_vm14 = vcmp.eq.s32.totalorder %v1353_v4, %v1355_v5  ;;  %v170_v5 = vld [vmem:[#allocation4 + $0x18] sm:$0xff] }
  0x64   : > { %1059 = vmatprep.subr.mxu1 %v377_v35  ;;  %1004 = vmatpush3.msra.mxu0 %v309_v32  ;;  %v876_v3 = vsel %vm259_vm14, 1.0, %v1239_v15  ;;  %vm327_vm15 = vcmp.eq.s32.totalorder %v1353_v4, %v1357_v6  ;;  %v171_v4 = vld [vmem:[#allocation4 + $0x20] sm:$0xff]  ;;  %v172_v6 = vld [vmem:[#allocation4 + $0x28] sm:$0xff] }
  0x65   : > { %1060 = vmatpush3.msra.mxu1 %v377_v35  ;;  %1005 = vmatprep.subr.mxu0 %v308_v39  ;;  %v307_v41 = vsub.f32 %v859_v33, %v876_v3  ;;  %v893_v42 = vsel %vm327_vm15, 1.0, %v1239_v15  ;;  %v173_v15 = vld [vmem:[#allocation4 + $0x30] sm:$0xff] }
  0x66   : > { %1061 = vmatprep.subr.mxu1 %v376_v40  ;;  %1006 = vmatpush3.msra.mxu0 %v308_v39  ;;  %v375_v43 = vsub.f32 %v859_v33, %v893_v42 }
  0x67   : > { %1062 = vmatpush3.msra.mxu1 %v376_v40  ;;  %1007 = vmatprep.subr.mxu0 %v307_v41 }
  0x68   : > { %1063 = vmatprep.subr.mxu1 %v375_v43  ;;  %1008 = vmatpush3.msra.mxu0 %v307_v41 }
  0x69   : > { %1064 = vmatpush3.msra.mxu1 %v375_v43  ;;  %1010 = vmatmul.mubr.f32.vlgmr.msra.gmra.mxu0 %v168_v44 }
  0x6a   : > { %1066 = vmatmul.mubr.f32.vlgmr.msra.gmra.mxu1 %v168_v44  ;;  %1012 = vmatprep.mubr.f32.mxu0 %v169_v45 }
  0x6b   : > { %1068 = vmatprep.mubr.f32.mxu1 %v169_v45 }
  0x6d   : > { %1013 = vmatmul.mubr.f32.gmra.mxu0 %v170_v5 }
  0x6e   : > { %1069 = vmatmul.mubr.f32.gmra.mxu1 %v170_v5  ;;  %1015 = vmatprep.mubr.f32.mxu0 %v171_v4 }
  0x6f   : > { %1071 = vmatprep.mubr.f32.mxu1 %v171_v4 }
  0x71   : > { %1016 = vmatmul.mubr.f32.gmra.mxu0 %v172_v6 }
  0x72   : > { %1072 = vmatmul.mubr.f32.gmra.mxu1 %v172_v6  ;;  %1018 = vmatprep.mubr.f32.mxu0 %v173_v15 }
  0x73   : > { %1074 = vmatprep.mubr.f32.mxu1 %v173_v15 }
  0x75   : > { %1019 = vmatmul.mubr.f32.gmra.mxu0 %v174_v46 }
  0x76   : > { %1075 = vmatmul.mubr.f32.gmra.mxu1 %v174_v46  ;;  %1021 = vmatprep.mubr.f32.mxu0 %v175_v47 }
  0x77   : > { %1077 = vmatprep.mubr.f32.mxu1 %v175_v47 }
  0x79   : > { %1022 = vmatmul.mubr.f32.gmra.mxu0 %v176_v48 }
  0x7a   : > { %1078 = vmatmul.mubr.f32.gmra.mxu1 %v176_v48  ;;  %1024 = vmatprep.mubr.f32.mxu0 %v177_v49 }
  0x7b   : > { %1080 = vmatprep.mubr.f32.mxu1 %v177_v49 }
  0x7d   : > { %1025 = vmatmul.mubr.f32.gmra.mxu0 %v178_v50 }
  0x7e   : > { %1081 = vmatmul.mubr.f32.gmra.mxu1 %v178_v50  ;;  %1027 = vmatprep.mubr.f32.mxu0 %v179_v51 }
  0x7f   : > { %1083 = vmatprep.mubr.f32.mxu1 %v179_v51 }
  0x81   : > { %1028 = vmatmul.mubr.f32.gmra.mxu0 %v180_v52 }
  0x82   : > { %1084 = vmatmul.mubr.f32.gmra.mxu1 %v180_v52  ;;  %1030 = vmatprep.mubr.f32.mxu0 %v181_v53 }
  0x83   : > { %1086 = vmatprep.mubr.f32.mxu1 %v181_v53 }
  0x85   : > { %1031 = vmatmul.mubr.f32.gmra.mxu0 %v182_v54 }
  0x86   : > { %1087 = vmatmul.mubr.f32.gmra.mxu1 %v182_v54 }
 0x129   : > { %v1011_v55 = vpop.f32.mrf.mxu0 }
 0x12a   : > { %v1067_v56 = vpop.f32.mrf.mxu1  ;;  %v682_v60 = vmul.f32 %v1011_v55, %v1011_v55 }
 0x12b   : > { %v457_v57 = vpop.f32.mrf.mxu0  ;;  %v698_v61 = vmul.f32 %v1067_v56, %v1067_v56 }
 0x12c   : > { %v681_v58 = vmul.f32 %v457_v57, %v457_v57  ;;  %v602_v59 = vpop.f32.mrf.mxu1 }
 0x12d   : > { %v697_v62 = vmul.f32 %v602_v59, %v602_v59  ;;  %v1014_v63 = vpop.f32.mrf.mxu0  ;;  %v714_v10 = vsub.f32 %v682_v60, %v698_v61 }
 0x12e   : > { %v1070_v0 = vpop.f32.mrf.mxu1  ;;  %v684_v11 = vmul.f32 %v1014_v63, %v1014_v63 }
 0x12f   : > { %v713_v2 = vsub.f32 %v681_v58, %v697_v62  ;;  %v467_v7 = vpop.f32.mrf.mxu0  ;;  %v700_v12 = vmul.f32 %v1070_v0, %v1070_v0 }
 0x130   : > { %v683_v8 = vmul.f32 %v467_v7, %v467_v7  ;;  %v612_v9 = vpop.f32.mrf.mxu1 }
 0x131   : > { %v699_v13 = vmul.f32 %v612_v9, %v612_v9  ;;  %v1017_v14 = vpop.f32.mrf.mxu0  ;;  %v729_v17 = vadd.f32 %v714_v10, %v713_v2  ;;  %v716_v24 = vsub.f32 %v684_v11, %v700_v12 }
 0x132   : > { %v1073_v16 = vpop.f32.mrf.mxu1  ;;  %v686_v20 = vmul.f32 %v1017_v14, %v1017_v14 }
 0x133   : > { %v715_v18 = vsub.f32 %v683_v8, %v699_v13  ;;  %v477_v19 = vpop.f32.mrf.mxu0  ;;  %v702_v21 = vmul.f32 %v1073_v16, %v1073_v16 }
 0x134   : > { %v685_v22 = vmul.f32 %v477_v19, %v477_v19  ;;  %v622_v23 = vpop.f32.mrf.mxu1 }
 0x135   : > { %v730_v25 = vadd.f32 %v729_v17, %v715_v18  ;;  %v701_v26 = vmul.f32 %v622_v23, %v622_v23  ;;  %v1020_v27 = vpop.f32.mrf.mxu0  ;;  %v718_v32 = vsub.f32 %v686_v20, %v702_v21 }
 0x136   : > { %v1076_v28 = vpop.f32.mrf.mxu1  ;;  %v688_v36 = vmul.f32 %v1020_v27, %v1020_v27 }
 0x137   : > { %v717_v29 = vsub.f32 %v685_v22, %v701_v26  ;;  %v731_v30 = vadd.f32 %v730_v25, %v716_v24  ;;  %v487_v31 = vpop.f32.mrf.mxu0  ;;  %v704_v37 = vmul.f32 %v1076_v28, %v1076_v28 }
 0x138   : > { %v687_v33 = vmul.f32 %v487_v31, %v487_v31  ;;  %v632_v34 = vpop.f32.mrf.mxu1 }
 0x139   : > { %v732_v35 = vadd.f32 %v731_v30, %v717_v29  ;;  %v703_v38 = vmul.f32 %v632_v34, %v632_v34  ;;  %v1023_v39 = vpop.f32.mrf.mxu0  ;;  %v720_v4 = vsub.f32 %v688_v36, %v704_v37  ;;  %v754_v34 = vstv %s1337_s9 }
 0x13a   : > { %v1079_v40 = vpop.f32.mrf.mxu1  ;;  %v690_v43 = vmul.f32 %v1023_v39, %v1023_v39 }
 0x13b   : > { %v719_v3 = vsub.f32 %v687_v33, %v703_v38  ;;  %v733_v41 = vadd.f32 %v732_v35, %v718_v32  ;;  %v497_v42 = vpop.f32.mrf.mxu0  ;;  %v706_v44 = vmul.f32 %v1079_v40, %v1079_v40  ;;  %v753_v32 = vand.u32 127, %v186_v1 }
 0x13c   : > { %v689_v45 = vmul.f32 %v497_v42, %v497_v42  ;;  %v642_v5 = vpop.f32.mrf.mxu1  ;;  %v756_v38 = vstv %s1332_s7 }
 0x13d   : > { %v734_v6 = vadd.f32 %v733_v41, %v719_v3  ;;  %v705_v15 = vmul.f32 %v642_v5, %v642_v5  ;;  %v1026_v46 = vpop.f32.mrf.mxu0  ;;  %v722_v51 = vsub.f32 %v690_v43, %v706_v44  ;;  %v755_v36 = vadd.s32 %v754_v34, %v753_v32 }
 0x13e   : > { %v1082_v47 = vpop.f32.mrf.mxu1  ;;  %v692_v55 = vmul.f32 %v1026_v46, %v1026_v46 }
 0x13f   : > { %v721_v48 = vsub.f32 %v689_v45, %v705_v15  ;;  %v735_v49 = vadd.f32 %v734_v6, %v720_v4  ;;  %v507_v50 = vpop.f32.mrf.mxu0  ;;  %v708_v56 = vmul.f32 %v1082_v47, %v1082_v47  ;;  %vm757_vm0 = vcmp.lt.s32.totalorder %v755_v36, %v756_v38 }
 0x140   : > { %v691_v52 = vmul.f32 %v507_v50, %v507_v50  ;;  %v652_v53 = vpop.f32.mrf.mxu1 }
 0x141   : > { %v736_v54 = vadd.f32 %v735_v49, %v721_v48  ;;  %v707_v57 = vmul.f32 %v652_v53, %v652_v53  ;;  %v1029_v58 = vpop.f32.mrf.mxu0  ;;  %v724_v8 = vsub.f32 %v692_v55, %v708_v56 }
 0x142   : > { %v1085_v59 = vpop.f32.mrf.mxu1  ;;  %v694_v63 = vmul.f32 %v1029_v58, %v1029_v58 }
 0x143   : > { %v723_v60 = vsub.f32 %v691_v52, %v707_v57  ;;  %v737_v61 = vadd.f32 %v736_v54, %v722_v51  ;;  %v517_v62 = vpop.f32.mrf.mxu0  ;;  %v710_v0 = vmul.f32 %v1085_v59, %v1085_v59 }
 0x144   : > { %v693_v2 = vmul.f32 %v517_v62, %v517_v62  ;;  %v662_v7 = vpop.f32.mrf.mxu1 }
 0x145   : > { %v738_v9 = vadd.f32 %v737_v61, %v723_v60  ;;  %v709_v10 = vmul.f32 %v662_v7, %v662_v7  ;;  %v1032_v11 = vpop.f32.mrf.mxu0  ;;  %v726_v17 = vsub.f32 %v694_v63, %v710_v0 }
 0x146   : > { %v1088_v12 = vpop.f32.mrf.mxu1  ;;  %v696_v21 = vmul.f32 %v1032_v11, %v1032_v11 }
 0x147   : > { %v725_v13 = vsub.f32 %v693_v2, %v709_v10  ;;  %v739_v14 = vadd.f32 %v738_v9, %v724_v8  ;;  %v527_v16 = vpop.f32.mrf.mxu0  ;;  %v712_v22 = vmul.f32 %v1088_v12, %v1088_v12 }
 0x148   : > { %v695_v18 = vmul.f32 %v527_v16, %v527_v16  ;;  %v672_v19 = vpop.f32.mrf.mxu1 }
 0x149   : > { %v740_v20 = vadd.f32 %v739_v14, %v725_v13  ;;  %v711_v23 = vmul.f32 %v672_v19, %v672_v19  ;;  %v728_v26 = vsub.f32 %v696_v21, %v712_v22 }
 0x14b   : > { %v727_v24 = vsub.f32 %v695_v18, %v711_v23  ;;  %v741_v25 = vadd.f32 %v740_v20, %v726_v17 }
 0x14d   : > { %v742_v27 = vadd.f32 %v741_v25, %v727_v24 }
 0x14f   : > { %v743_v28 = vadd.f32 %v742_v27, %v728_v26 }
 0x151   : > { %v744_v29 = vrot.slane %v743_v28, 4 }
 0x153   : > { %v745_v30 = vadd.f32 %v744_v29, %v743_v28 }
 0x155   : > { %v746_v31 = vrot.slane %v745_v30, 2 }
 0x157   : > { %v747_v33 = vadd.f32 %v746_v31, %v745_v30 }
 0x159   : > { %v748_v35 = vrot.slane %v747_v33, 1 }
 0x15b   : > { %v749_v37 = vadd.f32 %v748_v35, %v747_v33 }
 0x15d   : > { %v750_v39 = vadd.f32 1.0, %v749_v37 }
 0x15f   : > { %v751_v40 = vmax.f32 %v750_v39, 0.0 }
 0x161   : > { %v758_v3 = vsel %vm757_vm0, %v751_v40, 0.0 }
 0x162   : > { %759 = vadd.xlane.f32.xlu0 %v758_v3 }
 0x1eb   : > { %v760_v41 = vpop.xlane.xlu0 %759 }
 0x1ec   : > { %761 = vst [vmem:[%s1343_s18] sm:$0xff] %v760_v41 }
 0x1ed PF: > { %s774_s21 = scalar_lea.hbm %s1539_s3, %s1337_s9  ;;  %s776_s25 = sshll.u32 %s1343_s18, 4  ;;  %s777_s25 = int_to_ptr.vmem [resolvable:$true] %s776_s25 }
 0x1ee   : > { %s763_s26 = scalar_lea.sflag [#allocation6], %s149_s6  ;;  %s1169_s27 = scalar_lea.vmem %s777_s25, 128 }
 0x1ef   : > { %p1170_p10 = scmp.ne.s32.totalorder %s777_s25, %s1169_s27  ;;  %s1240_s28 = smov [#allocation7]  }
 0x1f0   : > { %s1173_s29 = sshll.u32 %s1240_s28, 4  ;;  %s1174_s29 = int_to_ptr.vmem [resolvable:$false] %s1173_s29 }
 0x1f1   : > { %p1171_p11 = pnand %p1170_p10, %p1302_p5  ;;  %s1175_s30 = scalar_lea.vmem %s1174_s29, 256 }
 0x1f2   : > { %p1176_p13 = scmp.lt.s32.totalorder %s777_s25, %s1174_s29  ;;  %p1177_p0 = scmp.lt.s32.totalorder %s1175_s30, %s1169_s27 }
 0x1f3   : > { %p1172_p12 = pneg %p1171_p11 }
 0x1f4   : > { %p1178_p1 = por %p1177_p0, %p1176_p13 }
 0x1f6   : > { %p1179_p2 = pnand %p1178_p1, %p1172_p12 }
 0x1f8   : > { %1182 = shalt.err (!%p1179_p2)
}
 0x1f9   : > { %s1183_s4 = scalar_lea.hbm %s774_s21, 128  ;;  %s1187_s7 = scalar_lea.hbm %s1539_s3, 512 }
 0x1fa   : > { %p1184_p3 = scmp.ne.s32.totalorder %s774_s21, %s1183_s4  ;;  %p1188_p6 = scmp.lt.s32.totalorder %s774_s21, %s1539_s3 }
 0x1fb   : > { %p1189_p8 = scmp.lt.s32.totalorder %s1187_s7, %s1183_s4 }
 0x1fc   : > { %p1185_p4 = pnand %p1184_p3, %p1302_p5 }
 0x1fd   : > { %p1190_p9 = por %p1189_p8, %p1188_p6 }
 0x1fe   : > { %p1186_p7 = pneg %p1185_p4 }
 0x200   : > { %p1191_p10 = pnand %p1190_p9, %p1186_p7 }
 0x202   : > { %1194 = shalt.err (!%p1191_p10)
}
 0x203   : > { %1093 = dma.vmem_to_hbm [thread:$0]  (%p1302_p5), %s777_s25, 128, %s774_s21, %s763_s26  }
 0x204 PF: > { %p1105_p11 = scmp.ge.s32.totalorder %s1233_s17, 2  ;;  %s788_s10 = sand.u32 1, %s1221_s14  }
 0x205   : > { %p1543_p12 = scmp.ne.s32.totalorder %s1541_s24, 0  ;;  %s789_s11 = scalar_lea.sflag [#allocation6], %s788_s10 }
 0x207   : > { %p1100_p13 = pnand %p1105_p11, %p1543_p12 }
 0x209   : > { %p1101_p0 = pneg %p1100_p13 }
 0x20b   : > { %1216 = dma.done.wait (%p1101_p0), %s789_s11, 128  }
 0x20c   : > { %1218 = vsyncadd (%p1101_p0), %s789_s11, 4294967168  ;;  %p15_p1 = scmp.ge.s32.totalorder %s1289_s19, 6   ;;  %s1544_s14 = smov %s1225_s15 }
 0x20d   : > { %s1545_s15 = smov %s1229_s16  ;;  %s1546_s16 = smov %s1300_s22 }
 0x20e   : > { %s1547_s17 = smov %s1289_s19  ;;  %17 = sbr.rel (!%p15_p1) target bundleno = 6 (0x6), region = 76 }
 0x213   :  { %794 = vsyncpa [#allocation5], 1 }
 0x214   :  { %796 = vsyncpa [#allocation5 + $0x1], 1 }
 0x215   :  { %797 = vsyncpa [#allocation6], 1 }
 0x216   :  { %799 = vsyncpa [#allocation6 + $0x1], 1 }

</bundles_post_ra>
